<compile_context>
chip_gen: v7x
topology: tpu7x:2x2x1
jax: 0.10.0
libtpu: 0.0.40
codegen_flags: <defaults>
</compile_context>

<pallas_src>
import jax
import jax.numpy as jnp
from jax.experimental import pallas as pl
from jax.experimental.pallas import tpu as pltpu


TILE_B = 256  # batch tile: multiple of 128 (MXU/lane friendly on all gens)


def _value_net_kernel(x_ref, w1_ref, b1_ref, w2_ref, b2_ref, w3_ref, b3_ref,
                      out_ref):
    # x_ref: (dim, TILE_B)  bf16, lane axis = batch
    x = x_ref[...]

    # Layer 1: (4d, dim) @ (dim, TILE_B) -> (4d, TILE_B), f32 accumulate.
    h1 = jnp.dot(w1_ref[...], x, preferred_element_type=jnp.float32)
    h1 = jnp.maximum(h1 + b1_ref[...], 0.0)          # f32 bias + ReLU (v5e-safe)

    # Layer 2: (4d, 4d) @ (4d, TILE_B) -> (4d, TILE_B)
    h2 = jnp.dot(w2_ref[...], h1.astype(w2_ref.dtype),
                 preferred_element_type=jnp.float32)
    h2 = jnp.maximum(h2 + b2_ref[...], 0.0)

    # Layer 3: (1, 4d) @ (4d, TILE_B) -> (1, TILE_B)  -- lane-dense output slab.
    out = jnp.dot(w3_ref[...], h2.astype(w3_ref.dtype),
                  preferred_element_type=jnp.float32)
    out_ref[...] = out + b3_ref[...]


def init_params(key, dim, dtype=jnp.bfloat16):
    # model_init() is not defined in the spec; use PyTorch nn.Linear default
    # (uniform +-1/sqrt(fan_in)). Weights stored PyTorch-style (out, in).
    ks = jax.random.split(key, 6)

    def lin(kw, kb, fan_in, fan_out):
        bound = float(fan_in) ** -0.5
        w = jax.random.uniform(kw, (fan_out, fan_in), jnp.float32, -bound, bound)
        b = jax.random.uniform(kb, (fan_out, 1), jnp.float32, -bound, bound)
        return w.astype(dtype), b  # bf16 MXU operands, f32 biases

    w1, b1 = lin(ks[0], ks[1], dim, 4 * dim)
    w2, b2 = lin(ks[2], ks[3], 4 * dim, 4 * dim)
    w3, b3 = lin(ks[4], ks[5], 4 * dim, 1)
    return dict(w1=w1, b1=b1, w2=w2, b2=b2, w3=w3, b3=b3)


def value_net_forward(params, worker_state, *, tile_b=TILE_B):
    """worker_state: (B, dim) f32 -> (B, 1) f32 (same semantics as the module)."""
    B, dim = worker_state.shape
    hid = params["w1"].shape[0]  # 4 * dim

    b_pad = ((B + tile_b - 1) // tile_b) * tile_b
    x = worker_state.astype(params["w1"].dtype)
    if b_pad != B:
        x = jnp.pad(x, ((0, b_pad - B), (0, 0)))
    x_t = x.T  # (dim, B_pad): feature axis on sublanes, batch on lanes

    grid = (b_pad // tile_b,)
    out = pl.pallas_call(
        _value_net_kernel,
        out_shape=jax.ShapeDtypeStruct((1, b_pad), jnp.float32),
        grid=grid,
        in_specs=[
            # streamed batch tiles
            pl.BlockSpec((dim, tile_b), lambda i: (0, i)),
            # VMEM-resident weights: constant block index across the whole grid
            pl.BlockSpec((hid, dim), lambda i: (0, 0)),
            pl.BlockSpec((hid, 1), lambda i: (0, 0)),
            pl.BlockSpec((hid, hid), lambda i: (0, 0)),
            pl.BlockSpec((hid, 1), lambda i: (0, 0)),
            pl.BlockSpec((1, hid), lambda i: (0, 0)),
            pl.BlockSpec((1, 1), lambda i: (0, 0)),
        ],
        out_specs=pl.BlockSpec((1, tile_b), lambda i: (0, i)),
        compiler_params=pltpu.CompilerParams(
            dimension_semantics=("parallel",)),  # v7x: shard batch across 2 TCs
    )(x_t, params["w1"], params["b1"], params["w2"], params["b2"],
      params["w3"], params["b3"])

    return out[0, :B].reshape(B, 1)


def _reference_forward(params, worker_state):
    """Pure-JAX reference (f32 math on the bf16-rounded weights/inputs)."""
    w1 = params["w1"].astype(jnp.float32)
    w2 = params["w2"].astype(jnp.float32)
    w3 = params["w3"].astype(jnp.float32)
    x = worker_state.astype(params["w1"].dtype).astype(jnp.float32)
    h1 = jnp.maximum(x @ w1.T + params["b1"][:, 0], 0.0)
    h2 = jnp.maximum(h1 @ w2.T + params["b2"][:, 0], 0.0)
    return h2 @ w3.T + params["b3"][:, 0]


if __name__ == "__main__":
    dim = 32          # model hidden dim (4*dim = 128 -> full lane width)
    batch = 512       # batched evaluation: 2 grid steps of TILE_B=256

    key = jax.random.PRNGKey(0)
    pkey, xkey = jax.random.split(key)
    params = init_params(pkey, dim)
    worker_state = jax.random.normal(xkey, (batch, dim), jnp.float32)

    out = value_net_forward(params, worker_state)
    jax.block_until_ready(out)

    expected = _reference_forward(params, worker_state)
    assert out.shape == (batch, 1)
    assert jnp.allclose(out, expected, rtol=5e-2, atol=5e-2), (
        "kernel output mismatch vs reference")

    print("KERNEL_OK")
</pallas_src>

<mosaic_0001>
module attributes {stable_mosaic.version = 11 : i64} {
  func.func @_value_net_kernel(%arg0: i32, %arg1: memref<32x256xbf16, #tpu.memory_space<vmem>>, %arg2: memref<128x32xbf16, #tpu.memory_space<vmem>>, %arg3: memref<128x1xf32, #tpu.memory_space<vmem>>, %arg4: memref<128x128xbf16, #tpu.memory_space<vmem>>, %arg5: memref<128x1xf32, #tpu.memory_space<vmem>>, %arg6: memref<1x128xbf16, #tpu.memory_space<vmem>>, %arg7: memref<1x1xf32, #tpu.memory_space<vmem>>, %arg8: memref<1x256xf32, #tpu.memory_space<vmem>>) attributes {dimension_semantics = [#tpu.dimension_semantics<parallel>], iteration_bounds = array<i64: 2>, scalar_prefetch = 0 : i64, scratch_operands = 0 : i64, tpu.core_type = #tpu.core_type<tc>, window_params = [{transform_indices = @transform_0, window_bounds = array<i64: 32, 256>}, {pipeline_mode = #tpu.pipeline_mode<synchronous>, transform_indices = @transform_1, window_bounds = array<i64: 128, 32>}, {pipeline_mode = #tpu.pipeline_mode<synchronous>, transform_indices = @transform_2, window_bounds = array<i64: 128, 1>}, {pipeline_mode = #tpu.pipeline_mode<synchronous>, transform_indices = @transform_3, window_bounds = array<i64: 128, 128>}, {pipeline_mode = #tpu.pipeline_mode<synchronous>, transform_indices = @transform_4, window_bounds = array<i64: 128, 1>}, {pipeline_mode = #tpu.pipeline_mode<synchronous>, transform_indices = @transform_5, window_bounds = array<i64: 1, 128>}, {pipeline_mode = #tpu.pipeline_mode<synchronous>, transform_indices = @transform_6, window_bounds = array<i64: 1, 1>}, {transform_indices = @transform_7, window_bounds = array<i64: 1, 256>}]} {
    %c0 = arith.constant 0 : index
    %c0_0 = arith.constant 0 : index
    %0 = vector.load %arg1[%c0, %c0_0] : memref<32x256xbf16, #tpu.memory_space<vmem>>, vector<32x256xbf16>
    %c0_1 = arith.constant 0 : index
    %c0_2 = arith.constant 0 : index
    %1 = vector.load %arg2[%c0_1, %c0_2] : memref<128x32xbf16, #tpu.memory_space<vmem>>, vector<128x32xbf16>
    %cst = arith.constant dense<0.000000e+00> : vector<128x256xf32>
    %2 = tpu.matmul %1, %0, %cst {dimension_numbers = #tpu.dot_dimension_numbers<[1], [0], [0], [1], [0, 0, 1, 1], [], []>} : vector<128x32xbf16>, vector<32x256xbf16>, vector<128x256xf32> -> vector<128x256xf32>
    %c0_3 = arith.constant 0 : index
    %c0_4 = arith.constant 0 : index
    %3 = vector.load %arg3[%c0_3, %c0_4] : memref<128x1xf32, #tpu.memory_space<vmem>>, vector<128x1xf32>
    %4 = vector.broadcast %3 : vector<128x1xf32> to vector<128x256xf32>
    %5 = arith.addf %2, %4 : vector<128x256xf32>
    %cst_5 = arith.constant 0.000000e+00 : f32
    %6 = vector.broadcast %cst_5 : f32 to vector<128x256xf32>
    %7 = arith.maximumf %5, %6 : vector<128x256xf32>
    %c0_6 = arith.constant 0 : index
    %c0_7 = arith.constant 0 : index
    %8 = vector.load %arg4[%c0_6, %c0_7] : memref<128x128xbf16, #tpu.memory_space<vmem>>, vector<128x128xbf16>
    %9 = arith.truncf %7 : vector<128x256xf32> to vector<128x256xbf16>
    %cst_8 = arith.constant dense<0.000000e+00> : vector<128x256xf32>
    %10 = tpu.matmul %8, %9, %cst_8 {dimension_numbers = #tpu.dot_dimension_numbers<[1], [0], [0], [1], [0, 0, 1, 1], [], []>} : vector<128x128xbf16>, vector<128x256xbf16>, vector<128x256xf32> -> vector<128x256xf32>
    %c0_9 = arith.constant 0 : index
    %c0_10 = arith.constant 0 : index
    %11 = vector.load %arg5[%c0_9, %c0_10] : memref<128x1xf32, #tpu.memory_space<vmem>>, vector<128x1xf32>
    %12 = vector.broadcast %11 : vector<128x1xf32> to vector<128x256xf32>
    %13 = arith.addf %10, %12 : vector<128x256xf32>
    %cst_11 = arith.constant 0.000000e+00 : f32
    %14 = vector.broadcast %cst_11 : f32 to vector<128x256xf32>
    %15 = arith.maximumf %13, %14 : vector<128x256xf32>
    %c0_12 = arith.constant 0 : index
    %c0_13 = arith.constant 0 : index
    %16 = vector.load %arg6[%c0_12, %c0_13] : memref<1x128xbf16, #tpu.memory_space<vmem>>, vector<1x128xbf16>
    %17 = arith.truncf %15 : vector<128x256xf32> to vector<128x256xbf16>
    %cst_14 = arith.constant dense<0.000000e+00> : vector<1x256xf32>
    %18 = tpu.matmul %16, %17, %cst_14 {dimension_numbers = #tpu.dot_dimension_numbers<[1], [0], [0], [1], [0, 0, 1, 1], [], []>} : vector<1x128xbf16>, vector<128x256xbf16>, vector<1x256xf32> -> vector<1x256xf32>
    %c0_15 = arith.constant 0 : index
    %c0_16 = arith.constant 0 : index
    %19 = vector.load %arg7[%c0_15, %c0_16] : memref<1x1xf32, #tpu.memory_space<vmem>>, vector<1x1xf32>
    %20 = vector.broadcast %19 : vector<1x1xf32> to vector<1x256xf32>
    %21 = arith.addf %18, %20 : vector<1x256xf32>
    %c0_17 = arith.constant 0 : index
    %c0_18 = arith.constant 0 : index
    %22 = vector.load %arg8[%c0_17, %c0_18] : memref<1x256xf32, #tpu.memory_space<vmem>>, vector<1x256xf32>
    tpu.vector_store %arg8[%c0_17, %c0_18], %21 {strides = array<i32>} : memref<1x256xf32, #tpu.memory_space<vmem>>, vector<1x256xf32>,
    return
  }
  func.func @transform_0(%arg0: i32) -> (i32, i32) {
    %c0_i32 = arith.constant 0 : i32
    %c0_i32_0 = arith.constant 0 : i32
    return %c0_i32, %arg0 : i32, i32
  }
  func.func @transform_1(%arg0: i32) -> (i32, i32) {
    %c0_i32 = arith.constant 0 : i32
    %c0_i32_0 = arith.constant 0 : i32
    %c0_i32_1 = arith.constant 0 : i32
    return %c0_i32, %c0_i32_0 : i32, i32
  }
  func.func @transform_2(%arg0: i32) -> (i32, i32) {
    %c0_i32 = arith.constant 0 : i32
    %c0_i32_0 = arith.constant 0 : i32
    %c0_i32_1 = arith.constant 0 : i32
    return %c0_i32, %c0_i32_0 : i32, i32
  }
  func.func @transform_3(%arg0: i32) -> (i32, i32) {
    %c0_i32 = arith.constant 0 : i32
    %c0_i32_0 = arith.constant 0 : i32
    %c0_i32_1 = arith.constant 0 : i32
    return %c0_i32, %c0_i32_0 : i32, i32
  }
  func.func @transform_4(%arg0: i32) -> (i32, i32) {
    %c0_i32 = arith.constant 0 : i32
    %c0_i32_0 = arith.constant 0 : i32
    %c0_i32_1 = arith.constant 0 : i32
    return %c0_i32, %c0_i32_0 : i32, i32
  }
  func.func @transform_5(%arg0: i32) -> (i32, i32) {
    %c0_i32 = arith.constant 0 : i32
    %c0_i32_0 = arith.constant 0 : i32
    %c0_i32_1 = arith.constant 0 : i32
    return %c0_i32, %c0_i32_0 : i32, i32
  }
  func.func @transform_6(%arg0: i32) -> (i32, i32) {
    %c0_i32 = arith.constant 0 : i32
    %c0_i32_0 = arith.constant 0 : i32
    %c0_i32_1 = arith.constant 0 : i32
    return %c0_i32, %c0_i32_0 : i32, i32
  }
  func.func @transform_7(%arg0: i32) -> (i32, i32) {
    %c0_i32 = arith.constant 0 : i32
    %c0_i32_0 = arith.constant 0 : i32
    return %c0_i32, %arg0 : i32, i32
  }
}

</mosaic_0001>

<bundles_post_ra>
// kernel: tpu_custom_call.1
= control target key start
LH: loop header
LB: loop body
LE: loop exit
PB: predicated region body
PF: predicated region fallthrough
CT: control target
= control target key end

     0   :  { %s1670_s0 = inlined_call_operand.vmem [shape: bf16[32,512], index: 0, kind: input, shape index: {}]   ;;  %s1671_s1 = inlined_call_operand.vmem [shape: bf16[128,32], index: 1, kind: input, shape index: {}]   ;;  %s1672_s2 = inlined_call_operand.vmem [shape: f32[128,1], index: 2, kind: input, shape index: {}]   ;;  %s1673_s3 = inlined_call_operand.vmem [shape: bf16[128,128], index: 3, kind: input, shape index: {}]   ;;  %s1674_s4 = inlined_call_operand.vmem [shape: f32[128,1], index: 4, kind: input, shape index: {}]   ;;  %s1675_s5 = inlined_call_operand.vmem [shape: bf16[1,128], index: 5, kind: input, shape index: {}]   ;;  %s1676_s6 = inlined_call_operand.<no memory space> [shape: f32[1,1], index: 6, kind: input, shape index: {}]   ;;  %s1677_s7 = inlined_call_operand.hbm [shape: f32[1,512], index: 7, kind: output, shape index: {}]  }
   0x1   :  { %v12_v0 = vstv %s1676_s6 }
   0x2   :  { %13 = vst [vmem:[#allocation2] sm:$0x1] %v12_v0 }
   0x3   :  { %14 = vsyncpa [#allocation5], 0 }
   0x4   :  { %16 = vsyncpa [#allocation5 + $0x1], 0  ;;  %s1386_s26 = smov 0   ;;  %s1388_s27 = smov 0  }
   0x5   :  { %s1390_s28 = smov 0   ;;  %s1392_s29 = smov 0  }
   0x6 LB: > { %s1166_s6 = sadd.s32 4294967295, %s1338_s29   ;;  %s1167_s30 = sadd.s32 4294967294, %s1338_s29   ;;  %s1338_s29 = sphi %s1392_s29, %s1683_s29   ;;  %s1334_s28 = sphi %s1390_s28, %s1682_s28   ;;  %s1330_s27 = sphi %s1388_s27, %s1681_s27   ;;  %s1326_s26 = sphi %s1386_s26, %s1680_s26  }
   0x7   : > { %s1409_s8 = sadd.s32 1, %s1338_s29   ;;  %s29_s9 = sadd.s32 1, %s1334_s28 }
   0x8   : > { %s26_s10 = ssub.s32 %s1338_s29, %s1409_s8  ;;  %p36_p0 = scmp.ne.s32.totalorder %s1334_s28, %s1330_s27 }
   0x9   : > { %p27_p1 = scmp.eq.s32.totalorder %s26_s10, 0  ;;  %p37_p2 = scmp.eq.s32.totalorder %s1338_s29, 0 }
   0xa   : > { %p192_p3 = scmp.eq.s32.totalorder %s1166_s6, 1  ;;  %p197_p4 = scmp.ne.s32.totalorder %s1330_s27, %s1326_s26 }
   0xb   : > { %s1422_s11 = scalar_select %p27_p1, %s1334_s28, %s29_s9  }
   0xc   : > { %p38_p5 = por %p37_p2, %p36_p0  ;;  %p1424_p6 = por %p192_p3, %p36_p0 }
   0xd   : > { %p198_p7 = scmp.eq.s32.totalorder %s1167_s30, 1  ;;  %p1169_p9 = scmp.ge.s32.totalorder %s1338_s29, 2 }
   0xf   : > { %p1428_p8 = por %p198_p7, %p197_p4  ;;  %232 = sbr.rel (%p1169_p9) target bundleno = 29 (0x1d), region = 40 }
  0x16   : > { %235 = sbr.rel (!%p38_p5) target bundleno = 29 (0x1d), region = 44  ;;  %s237_s14 = sand.u32 (%p38_p5), 1, %s1334_s28  }
  0x17   : > { %s1209_s15 = sshll.u32 (%p38_p5), %s1338_s29, 3  ;;  %s1170_s16 = sshll.u32 (%p38_p5), %s237_s14, 5 }
  0x18   : > { %s242_s19 = scalar_lea.vmem (%p38_p5), %s1670_s0, %s1209_s15  ;;  %s239_s20 = scalar_lea.vmem (%p38_p5), [#allocation3], %s1170_s16 }
  0x19   : > { %v276_v1 = vld [vmem:[%s242_s19] sm:$0xff] (%p38_p5)  ;;  %v278_v2 = vld [vmem:[%s242_s19 + $0x10] sm:$0xff] (%p38_p5) }
  0x1a   : > { %v280_v3 = vld [vmem:[%s242_s19 + $0x20] sm:$0xff] (%p38_p5)  ;;  %277 = vst [vmem:[%s239_s20] sm:$0xff] (%p38_p5), %v276_v1  ;;  %279 = vst [vmem:[%s239_s20 + $0x8] sm:$0xff] (%p38_p5), %v278_v2  ;;  %v282_v4 = vld [vmem:[%s242_s19 + $0x30] sm:$0xff] (%p38_p5) }
  0x1b   : > { %281 = vst [vmem:[%s239_s20 + $0x10] sm:$0xff] (%p38_p5), %v280_v3  ;;  %283 = vst [vmem:[%s239_s20 + $0x18] sm:$0xff] (%p38_p5), %v282_v4 }
  0x1d PF: > { %p1173_p10 = scmp.ge.s32.totalorder %s1338_s29, 1  ;;  %p288_p11 = scmp.lt.s32.totalorder %s1338_s29, 3 }
  0x1f   : > { %p289_p12 = pnand %p1173_p10, %p288_p11 }
  0x20   : > { %s1443_s21 = sand.u32 (!%p289_p12), 1, %s1330_s27   ;;  %v1340_v5 = vmov (!%p289_p12), 0   ;;  %v1260_v10 = vld [vmem:[%s1671_s1] sm:$0xff] (!%p289_p12)   ;;  %vm505_vm0 = vcmask (!%p289_p12), 261120   ;;  %v351_v12 = vld [vmem:[%s1672_s2 + $0x10] sm:$0xff] (!%p289_p12)  ;;  %v350_v13 = vld [vmem:[%s1672_s2 + $0x8] sm:$0xff] (!%p289_p12) }
  0x21   : > { %292 = sbr.rel (%p289_p12) target bundleno = 841 (0x349), region = 82  ;;  %s1174_s22 = sshll.u32 (!%p289_p12), %s1443_s21, 5  ;;  %562 = vmatprep.mubr.bf16.mxu0 (!%p289_p12), %v1340_v5  ;;  %1252 = vset.pattern.permute.xlu0 (!%p289_p12), %v1340_v5  ;;  %v349_v11 = vld [vmem:[%s1672_s2] sm:$0xff] (!%p289_p12)  ;;  %v352_v14 = vld [vmem:[%s1672_s2 + $0x18] sm:$0xff] (!%p289_p12)  ;;  %v354_v16 = vld [vmem:[%s1672_s2 + $0x28] sm:$0xff] (!%p289_p12) }
  0x22   : > { %1253 = vset.pattern.permute.xlu1 (!%p289_p12), %v1340_v5  ;;  %883 = vmatprep.mubr.bf16.mxu1 (!%p289_p12), %v1340_v5  ;;  %s297_s23 = scalar_lea.vmem (!%p289_p12), [#allocation3], %s1174_s22  ;;  %v353_v15 = vld [vmem:[%s1672_s2 + $0x20] sm:$0xff] (!%p289_p12)  ;;  %v1261_v17 = vld [vmem:[%s1671_s1 + $0x8] sm:$0xff] (!%p289_p12)   ;;  %v355_v18 = vld [vmem:[%s1672_s2 + $0x30] sm:$0xff] (!%p289_p12)  ;;  %s1175_s24 = sshll.u32 (!%p289_p12), %s1443_s21, 1 }
  0x23   : > { %v1254_v6 = vld [vmem:[%s297_s23 + $0x4] ss:$8 sps:$4 sm:$0xff] (!%p289_p12)   ;;  %v1256_v7 = vld [vmem:[%s297_s23] ss:$8 sps:$4 sm:$0xff] (!%p289_p12)   ;;  %v1257_v8 = vld [vmem:[%s297_s23 + $0x14] ss:$8 sps:$4 sm:$0xff] (!%p289_p12)   ;;  %367 = vperm.xlu0 (!%p289_p12), %1252, %v349_v11   ;;  %377 = vperm.xlu1 (!%p289_p12), %1253, %v351_v12  }
  0x24   : > { %530 = vmatprep.subr.bf16.mxu0 (!%p289_p12), %v1254_v6  ;;  %v1259_v9 = vld [vmem:[%s297_s23 + $0x10] ss:$8 sps:$4 sm:$0xff] (!%p289_p12)   ;;  %v357_v20 = vld [vmem:[%s1672_s2 + $0x40] sm:$0xff] (!%p289_p12)  ;;  %v358_v21 = vld [vmem:[%s1672_s2 + $0x48] sm:$0xff] (!%p289_p12)  ;;  %s1210_s25 = sshll.u32 (!%p289_p12), %s1166_s6, 5  ;;  %s325_s30 = scalar_lea.vmem (!%p289_p12), [#allocation4], %s1175_s24 }
  0x25   : > { %531 = vmatpush1.bf16.msra.mxu0 (!%p289_p12), %v1256_v7  ;;  %v356_v19 = vld [vmem:[%s1672_s2 + $0x38] sm:$0xff] (!%p289_p12)  ;;  %v1262_v22 = vld [vmem:[%s1671_s1 + $0x10] sm:$0xff] (!%p289_p12)   ;;  %v361_v25 = vld [vmem:[%s1672_s2 + $0x60] sm:$0xff] (!%p289_p12)  ;;  %s1102_s9 = sshll.u32 (!%p289_p12), %s325_s30, 4  ;;  %s1626_s15 = scalar_lea.hbm (!%p289_p12), %s1677_s7, %s1210_s25  ;;  %s1628_s9 = int_to_ptr.vmem [resolvable:$true] %s1102_s9 }
  0x26   : > { %532 = vmatprep.subr.bf16.mxu0 (!%p289_p12), %v1257_v8  ;;  %v359_v23 = vld [vmem:[%s1672_s2 + $0x50] sm:$0xff] (!%p289_p12)  ;;  %v360_v24 = vld [vmem:[%s1672_s2 + $0x58] sm:$0xff] (!%p289_p12)  ;;  %v362_v26 = vld [vmem:[%s1672_s2 + $0x68] sm:$0xff] (!%p289_p12)  ;;  %s1088_s16 = scalar_lea.sflag (!%p289_p12), [#allocation5], %s1443_s21  ;;  %s1276_s17 = scalar_lea.vmem (!%p289_p12), %s1628_s9, 32 }
  0x27   : > { %372 = vperm.xlu0 (!%p289_p12), %1252, %v350_v13   ;;  %382 = vperm.xlu1 (!%p289_p12), %1253, %v352_v14   ;;  %v1263_v27 = vld [vmem:[%s1671_s1 + $0x18] sm:$0xff] (!%p289_p12)   ;;  %v363_v28 = vld [vmem:[%s1672_s2 + $0x70] sm:$0xff] (!%p289_p12)  ;;  %v707_v30 = vld [vmem:[%s1674_s4] sm:$0xff] (!%p289_p12)  ;;  %p1277_p13 = scmp.ne.s32.totalorder (!%p289_p12), %s1628_s9, %s1276_s17  ;;  %s1342_s6 = smov (!%p289_p12), [#allocation4]  }
  0x28   : > { %v364_v29 = vld [vmem:[%s1672_s2 + $0x78] sm:$0xff]  ;;  %v708_v31 = vld [vmem:[%s1674_s4 + $0x8] sm:$0xff]  ;;  %v1264_v32 = vld [vmem:[%s1671_s1 + $0x20] sm:$0xff]   ;;  %s1280_s18 = sshll.u32 %s1342_s6, 4  ;;  %s1281_s18 = int_to_ptr.vmem [resolvable:$false] %s1280_s18 }
  0x29   : > { %533 = vmatpush1.bf16.msra.mxu0 %v1259_v9  ;;  %v709_v33 = vld [vmem:[%s1674_s4 + $0x10] sm:$0xff]  ;;  %v710_v34 = vld [vmem:[%s1674_s4 + $0x18] sm:$0xff]  ;;  %v711_v35 = vld [vmem:[%s1674_s4 + $0x20] sm:$0xff]  ;;  %p1278_p0 = pnand %p1277_p13, %p1424_p6  ;;  %s1282_s19 = scalar_lea.vmem %s1281_s18, 64 }
  0x2a   : > { %v712_v36 = vld [vmem:[%s1674_s4 + $0x28] sm:$0xff]  ;;  %v713_v38 = vld [vmem:[%s1674_s4 + $0x30] sm:$0xff]  ;;  %v714_v39 = vld [vmem:[%s1674_s4 + $0x38] sm:$0xff]  ;;  %p1283_p2 = scmp.lt.s32.totalorder %s1628_s9, %s1281_s18  ;;  %p1284_p3 = scmp.lt.s32.totalorder %s1282_s19, %s1276_s17 }
  0x2b   : > { %387 = vperm.xlu0 %1252, %v353_v15   ;;  %392 = vperm.xlu1 %1253, %v354_v16   ;;  %v1265_v37 = vld [vmem:[%s1671_s1 + $0x28] sm:$0xff]   ;;  %v715_v40 = vld [vmem:[%s1674_s4 + $0x40] sm:$0xff]  ;;  %v1266_v42 = vld [vmem:[%s1671_s1 + $0x30] sm:$0xff]   ;;  %p1279_p1 = pneg %p1278_p0 }
  0x2c   : > { %1188 = vmatmul.mubr.msk.bf16.vlgmr.msra.gmra.mrb[0].mxu0 %vm505_vm0, %v1260_v10  ;;  %v716_v41 = vld [vmem:[%s1674_s4 + $0x48] sm:$0xff]  ;;  %v717_v43 = vld [vmem:[%s1674_s4 + $0x50] sm:$0xff]  ;;  %v718_v44 = vld [vmem:[%s1674_s4 + $0x58] sm:$0xff]  ;;  %p1285_p4 = por %p1284_p3, %p1283_p2 }
  0x2d   : > { %572 = vmatprep.mubr.bf16.mxu0 %v1340_v5  ;;  %v719_v45 = vld [vmem:[%s1674_s4 + $0x60] sm:$0xff]  ;;  %v720_v46 = vld [vmem:[%s1674_s4 + $0x68] sm:$0xff]  ;;  %v1267_v47 = vld [vmem:[%s1671_s1 + $0x38] sm:$0xff]  }
  0x2e   : > { %v721_v48 = vld [vmem:[%s1674_s4 + $0x70] sm:$0xff]  ;;  %v722_v49 = vld [vmem:[%s1674_s4 + $0x78] sm:$0xff]  ;;  %v1013_v50 = vld [vmem:[#allocation2] sm:$0x1]  ;;  %p1286_p5 = pnand %p1285_p4, %p1279_p1 }
  0x2f   : > { %397 = vperm.xlu0 %1252, %v355_v18   ;;  %402 = vperm.xlu1 %1253, %v356_v19  }
  0x33   : > { %407 = vperm.xlu0 %1252, %v357_v20   ;;  %412 = vperm.xlu1 %1253, %v358_v21  }
  0x34   : > { %1189 = vmatmul.mubr.msk.bf16.gmra.mrb[4].mxu0 %vm505_vm0, %v1261_v17 }
  0x35   : > { %582 = vmatprep.mubr.bf16.mxu0 %v1340_v5 }
  0x37   : > { %417 = vperm.xlu0 %1252, %v359_v23   ;;  %422 = vperm.xlu1 %1253, %v360_v24  }
  0x3b   : > { %427 = vperm.xlu0 %1252, %v361_v25   ;;  %432 = vperm.xlu1 %1253, %v362_v26  }
  0x3c   : > { %1190 = vmatmul.mubr.msk.bf16.gmra.mrb[8].mxu0 %vm505_vm0, %v1262_v22 }
  0x3d   : > { %592 = vmatprep.mubr.bf16.mxu0 %v1340_v5 }
  0x3f   : > { %437 = vperm.xlu0 %1252, %v363_v28   ;;  %442 = vperm.xlu1 %1253, %v364_v29  }
  0x43   : > { %725 = vperm.xlu0 %1252, %v707_v30   ;;  %730 = vperm.xlu1 %1253, %v708_v31  }
  0x44   : > { %1191 = vmatmul.mubr.msk.bf16.gmra.mrb[12].mxu0 %vm505_vm0, %v1263_v27 }
  0x45   : > { %602 = vmatprep.mubr.bf16.mxu0 %v1340_v5 }
  0x47   : > { %735 = vperm.xlu0 %1252, %v709_v33   ;;  %740 = vperm.xlu1 %1253, %v710_v34  }
  0x4b   : > { %745 = vperm.xlu0 %1252, %v711_v35   ;;  %750 = vperm.xlu1 %1253, %v712_v36  }
  0x4c   : > { %1192 = vmatmul.mubr.msk.bf16.gmra.mrb[16].mxu0 %vm505_vm0, %v1264_v32 }
  0x4d   : > { %612 = vmatprep.mubr.bf16.mxu0 %v1340_v5 }
  0x4f   : > { %755 = vperm.xlu0 %1252, %v713_v38   ;;  %760 = vperm.xlu1 %1253, %v714_v39  }
  0x53   : > { %765 = vperm.xlu0 %1252, %v715_v40   ;;  %770 = vperm.xlu1 %1253, %v716_v41  }
  0x54   : > { %1193 = vmatmul.mubr.msk.bf16.gmra.mrb[20].mxu0 %vm505_vm0, %v1265_v37 }
  0x55   : > { %622 = vmatprep.mubr.bf16.mxu0 %v1340_v5 }
  0x57   : > { %775 = vperm.xlu0 %1252, %v717_v43   ;;  %780 = vperm.xlu1 %1253, %v718_v44  }
  0x5b   : > { %785 = vperm.xlu0 %1252, %v719_v45   ;;  %790 = vperm.xlu1 %1253, %v720_v46  }
  0x5c   : > { %1194 = vmatmul.mubr.msk.bf16.gmra.mrb[24].mxu0 %vm505_vm0, %v1266_v42 }
  0x5d   : > { %632 = vmatprep.mubr.bf16.mxu0 %v1340_v5 }
  0x5f   : > { %795 = vperm.xlu0 %1252, %v721_v48   ;;  %800 = vperm.xlu1 %1253, %v722_v49  }
  0x63   : > { %1016 = vperm.xlu0 %1252, %v1013_v50  }
  0x64   : > { %1195 = vmatmul.mubr.msk.bf16.gmra.mrb[28].mxu0 %vm505_vm0, %v1267_v47 }
  0x65   : > { %1055 = vmatprep.mubr.bf16.mxu0 %v1340_v5 }
  0xa2   : > { %v368_v51 = vpop.permute.xlu0 %367  ;;  %v378_v60 = vpop.permute.xlu1 %377 }
  0xa6   : > { %v373_v55 = vpop.permute.xlu0 %372  ;;  %v383_v8 = vpop.permute.xlu1 %382 }
  0xaa   : > { %v388_v19 = vpop.permute.xlu0 %387  ;;  %v393_v24 = vpop.permute.xlu1 %392 }
  0xae   : > { %v398_v35 = vpop.permute.xlu0 %397  ;;  %v403_v40 = vpop.permute.xlu1 %402 }
  0xff   : > { %v564_v52 = vpop.f32.mrb[0].mxu0 }
 0x100   : > { %v565_v53 = vadd.f32 %v564_v52, %v368_v51  ;;  %v566_v54 = vpop.f32.mrb[1].mxu0 }
 0x101   : > { %v567_v56 = vadd.f32 %v566_v54, %v368_v51  ;;  %v568_v57 = vpop.f32.mrb[2].mxu0  ;;  %v408_v51 = vpop.permute.xlu0 %407 }
 0x102   : > { %v569_v58 = vadd.f32 %v568_v57, %v373_v55  ;;  %v570_v59 = vpop.f32.mrb[3].mxu0  ;;  %v643_v62 = vmax.f32 %v565_v53, 0.0 }
 0x103   : > { %v571_v61 = vadd.f32 %v570_v59, %v373_v55  ;;  %v644_v0 = vmax.f32 %v567_v56, 0.0  ;;  %v413_v56 = vpop.permute.xlu1 %412 }
 0x104   : > { %v645_v63 = vmax.f32 %v569_v58, 0.0 }
 0x105   : > { %v646_v1 = vmax.f32 %v571_v61, 0.0 }
 0x106   : > { %v691_v2 = vpack.c.bf16 %v645_v63, %v643_v62 }
 0x107   : > { %v574_v3 = vpop.f32.mrb[4].mxu0  ;;  %v692_v4 = vpack.c.bf16 %v646_v1, %v644_v0 }
 0x108   : > { %v575_v6 = vadd.f32 %v574_v3, %v378_v60  ;;  %v576_v7 = vpop.f32.mrb[5].mxu0  ;;  %v418_v3 = vpop.permute.xlu0 %417 }
 0x109   : > { %v577_v9 = vadd.f32 %v576_v7, %v378_v60  ;;  %v578_v10 = vpop.f32.mrb[6].mxu0  ;;  %851 = vmatprep.subr.bf16.mxu1 %v692_v4 }
 0x10a   : > { %v579_v11 = vadd.f32 %v578_v10, %v383_v8  ;;  %v580_v12 = vpop.f32.mrb[7].mxu0  ;;  %852 = vmatpush1.bf16.msra.mxu1 %v691_v2  ;;  %v647_v14 = vmax.f32 %v575_v6, 0.0 }
 0x10b   : > { %v581_v13 = vadd.f32 %v580_v12, %v383_v8  ;;  %v648_v16 = vmax.f32 %v577_v9, 0.0  ;;  %v423_v9 = vpop.permute.xlu1 %422 }
 0x10c   : > { %v649_v15 = vmax.f32 %v579_v11, 0.0 }
 0x10d   : > { %v650_v17 = vmax.f32 %v581_v13, 0.0 }
 0x10e   : > { %v693_v18 = vpack.c.bf16 %v649_v15, %v647_v14 }
 0x10f   : > { %v694_v20 = vpack.c.bf16 %v650_v17, %v648_v16  ;;  %v584_v21 = vpop.f32.mrb[8].mxu0 }
 0x110   : > { %v585_v22 = vadd.f32 %v584_v21, %v388_v19  ;;  %v586_v23 = vpop.f32.mrb[9].mxu0 }
 0x111   : > { %v587_v25 = vadd.f32 %v586_v23, %v388_v19  ;;  %v588_v26 = vpop.f32.mrb[10].mxu0  ;;  %853 = vmatprep.subr.bf16.mxu1 %v694_v20  ;;  %v428_v20 = vpop.permute.xlu0 %427 }
 0x112   : > { %v589_v27 = vadd.f32 %v588_v26, %v393_v24  ;;  %v590_v28 = vpop.f32.mrb[11].mxu0  ;;  %854 = vmatpush1.bf16.msra.mxu1 %v693_v18  ;;  %v651_v30 = vmax.f32 %v585_v22, 0.0 }
 0x113   : > { %v591_v29 = vadd.f32 %v590_v28, %v393_v24  ;;  %v652_v32 = vmax.f32 %v587_v25, 0.0  ;;  %v433_v25 = vpop.permute.xlu1 %432 }
 0x114   : > { %v653_v31 = vmax.f32 %v589_v27, 0.0 }
 0x115   : > { %v654_v33 = vmax.f32 %v591_v29, 0.0 }
 0x116   : > { %v695_v34 = vpack.c.bf16 %v653_v31, %v651_v30 }
 0x117   : > { %v696_v36 = vpack.c.bf16 %v654_v33, %v652_v32  ;;  %v594_v37 = vpop.f32.mrb[12].mxu0 }
 0x118   : > { %v595_v38 = vadd.f32 %v594_v37, %v398_v35  ;;  %v596_v39 = vpop.f32.mrb[13].mxu0 }
 0x119   : > { %v597_v41 = vadd.f32 %v596_v39, %v398_v35  ;;  %v598_v42 = vpop.f32.mrb[14].mxu0  ;;  %855 = vmatprep.subr.bf16.mxu1 %v696_v36  ;;  %v438_v36 = vpop.permute.xlu0 %437 }
 0x11a   : > { %v599_v43 = vadd.f32 %v598_v42, %v403_v40  ;;  %v600_v44 = vpop.f32.mrb[15].mxu0  ;;  %856 = vmatpush1.bf16.msra.mxu1 %v695_v34  ;;  %v655_v46 = vmax.f32 %v595_v38, 0.0 }
 0x11b   : > { %v601_v45 = vadd.f32 %v600_v44, %v403_v40  ;;  %v656_v48 = vmax.f32 %v597_v41, 0.0  ;;  %v443_v41 = vpop.permute.xlu1 %442 }
 0x11c   : > { %v657_v47 = vmax.f32 %v599_v43, 0.0 }
 0x11d   : > { %v658_v49 = vmax.f32 %v601_v45, 0.0 }
 0x11e   : > { %v697_v50 = vpack.c.bf16 %v657_v47, %v655_v46 }
 0x11f   : > { %v698_v52 = vpack.c.bf16 %v658_v49, %v656_v48  ;;  %v604_v53 = vpop.f32.mrb[16].mxu0 }
 0x120   : > { %v605_v54 = vadd.f32 %v604_v53, %v408_v51  ;;  %v606_v55 = vpop.f32.mrb[17].mxu0  ;;  %v1268_v53 = vld [vmem:[%s1673_s3] sm:$0xff]  }
 0x121   : > { %v607_v57 = vadd.f32 %v606_v55, %v408_v51  ;;  %v608_v58 = vpop.f32.mrb[18].mxu0  ;;  %857 = vmatprep.subr.bf16.mxu1 %v698_v52  ;;  %v1270_v55 = vld [vmem:[%s1673_s3 + $0x10] sm:$0xff]  }
 0x122   : > { %v609_v59 = vadd.f32 %v608_v58, %v413_v56  ;;  %v610_v60 = vpop.f32.mrb[19].mxu0  ;;  %858 = vmatpush1.bf16.msra.mxu1 %v697_v50  ;;  %v659_v62 = vmax.f32 %v605_v54, 0.0  ;;  %v1269_v54 = vld [vmem:[%s1673_s3 + $0x8] sm:$0xff]  }
 0x123   : > { %v611_v61 = vadd.f32 %v610_v60, %v413_v56  ;;  %v660_v0 = vmax.f32 %v607_v57, 0.0  ;;  %v1271_v56 = vld [vmem:[%s1673_s3 + $0x18] sm:$0xff]   ;;  %v1272_v57 = vld [vmem:[%s1673_s3 + $0x20] sm:$0xff]   ;;  %v1273_v58 = vld [vmem:[%s1673_s3 + $0x28] sm:$0xff]  }
 0x124   : > { %v661_v63 = vmax.f32 %v609_v59, 0.0  ;;  %v1274_v59 = vld [vmem:[%s1673_s3 + $0x30] sm:$0xff]   ;;  %v1275_v60 = vld [vmem:[%s1673_s3 + $0x38] sm:$0xff]  }
 0x125   : > { %v662_v1 = vmax.f32 %v611_v61, 0.0  ;;  %v726_v61 = vpop.permute.xlu0 %725 }
 0x126   : > { %v699_v2 = vpack.c.bf16 %v661_v63, %v659_v62 }
 0x127   : > { %v700_v4 = vpack.c.bf16 %v662_v1, %v660_v0  ;;  %v614_v6 = vpop.f32.mrb[20].mxu0  ;;  %v731_v1 = vpop.permute.xlu1 %730 }
 0x128   : > { %v615_v7 = vadd.f32 %v614_v6, %v418_v3  ;;  %v616_v8 = vpop.f32.mrb[21].mxu0 }
 0x129   : > { %v617_v10 = vadd.f32 %v616_v8, %v418_v3  ;;  %v618_v11 = vpop.f32.mrb[22].mxu0  ;;  %859 = vmatprep.subr.bf16.mxu1 %v700_v4 }
 0x12a   : > { %v619_v12 = vadd.f32 %v618_v11, %v423_v9  ;;  %v620_v13 = vpop.f32.mrb[23].mxu0  ;;  %860 = vmatpush1.bf16.msra.mxu1 %v699_v2  ;;  %v663_v15 = vmax.f32 %v615_v7, 0.0 }
 0x12b   : > { %v621_v14 = vadd.f32 %v620_v13, %v423_v9  ;;  %v664_v17 = vmax.f32 %v617_v10, 0.0 }
 0x12c   : > { %v665_v16 = vmax.f32 %v619_v12, 0.0  ;;  %v736_v12 = vpop.permute.xlu0 %735 }
 0x12d   : > { %v666_v18 = vmax.f32 %v621_v14, 0.0 }
 0x12e   : > { %v701_v19 = vpack.c.bf16 %v665_v16, %v663_v15 }
 0x12f   : > { %v702_v21 = vpack.c.bf16 %v666_v18, %v664_v17  ;;  %v624_v22 = vpop.f32.mrb[24].mxu0  ;;  %v741_v17 = vpop.permute.xlu1 %740 }
 0x130   : > { %v625_v23 = vadd.f32 %v624_v22, %v428_v20  ;;  %v626_v24 = vpop.f32.mrb[25].mxu0 }
 0x131   : > { %v627_v26 = vadd.f32 %v626_v24, %v428_v20  ;;  %v628_v27 = vpop.f32.mrb[26].mxu0  ;;  %861 = vmatprep.subr.bf16.mxu1 %v702_v21 }
 0x132   : > { %v629_v28 = vadd.f32 %v628_v27, %v433_v25  ;;  %v630_v29 = vpop.f32.mrb[27].mxu0  ;;  %862 = vmatpush1.bf16.msra.mxu1 %v701_v19  ;;  %v667_v31 = vmax.f32 %v625_v23, 0.0 }
 0x133   : > { %v631_v30 = vadd.f32 %v630_v29, %v433_v25  ;;  %v668_v33 = vmax.f32 %v627_v26, 0.0 }
 0x134   : > { %v669_v32 = vmax.f32 %v629_v28, 0.0  ;;  %v746_v28 = vpop.permute.xlu0 %745 }
 0x135   : > { %v670_v34 = vmax.f32 %v631_v30, 0.0 }
 0x136   : > { %v703_v35 = vpack.c.bf16 %v669_v32, %v667_v31 }
 0x137   : > { %v704_v37 = vpack.c.bf16 %v670_v34, %v668_v33  ;;  %v634_v38 = vpop.f32.mrb[28].mxu0  ;;  %v751_v33 = vpop.permute.xlu1 %750 }
 0x138   : > { %v635_v39 = vadd.f32 %v634_v38, %v438_v36  ;;  %v636_v40 = vpop.f32.mrb[29].mxu0 }
 0x139   : > { %v637_v42 = vadd.f32 %v636_v40, %v438_v36  ;;  %v638_v43 = vpop.f32.mrb[30].mxu0  ;;  %863 = vmatprep.subr.bf16.mxu1 %v704_v37 }
 0x13a   : > { %v639_v44 = vadd.f32 %v638_v43, %v443_v41  ;;  %v640_v45 = vpop.f32.mrb[31].mxu0  ;;  %864 = vmatpush1.bf16.msra.mxu1 %v703_v35  ;;  %v671_v47 = vmax.f32 %v635_v39, 0.0 }
 0x13b   : > { %v641_v46 = vadd.f32 %v640_v45, %v443_v41  ;;  %v672_v49 = vmax.f32 %v637_v42, 0.0 }
 0x13c   : > { %v673_v48 = vmax.f32 %v639_v44, 0.0  ;;  %v756_v44 = vpop.permute.xlu0 %755 }
 0x13d   : > { %v674_v50 = vmax.f32 %v641_v46, 0.0 }
 0x13e   : > { %v705_v51 = vpack.c.bf16 %v673_v48, %v671_v47 }
 0x13f   : > { %v706_v52 = vpack.c.bf16 %v674_v50, %v672_v49  ;;  %v761_v49 = vpop.permute.xlu1 %760 }
 0x141   : > { %865 = vmatprep.subr.bf16.mxu1 %v706_v52 }
 0x142   : > { %866 = vmatpush1.bf16.msra.mxu1 %v705_v51 }
 0x145   : > { %884 = vmatmul.mubr.bf16.vlgmr.msra.gmra.mrb[0].mxu1 %v1268_v53 }
 0x146   : > { %893 = vmatprep.mubr.bf16.mxu1 %v1340_v5 }
 0x14d   : > { %894 = vmatmul.mubr.bf16.gmra.mrb[4].mxu1 %v1269_v54 }
 0x14e   : > { %903 = vmatprep.mubr.bf16.mxu1 %v1340_v5 }
 0x155   : > { %904 = vmatmul.mubr.bf16.gmra.mrb[8].mxu1 %v1270_v55 }
 0x156   : > { %913 = vmatprep.mubr.bf16.mxu1 %v1340_v5 }
 0x15d   : > { %914 = vmatmul.mubr.bf16.gmra.mrb[12].mxu1 %v1271_v56 }
 0x15e   : > { %923 = vmatprep.mubr.bf16.mxu1 %v1340_v5 }
 0x165   : > { %924 = vmatmul.mubr.bf16.gmra.mrb[16].mxu1 %v1272_v57 }
 0x166   : > { %933 = vmatprep.mubr.bf16.mxu1 %v1340_v5 }
 0x16d   : > { %934 = vmatmul.mubr.bf16.gmra.mrb[20].mxu1 %v1273_v58 }
 0x16e   : > { %943 = vmatprep.mubr.bf16.mxu1 %v1340_v5 }
 0x175   : > { %944 = vmatmul.mubr.bf16.gmra.mrb[24].mxu1 %v1274_v59 }
 0x176   : > { %953 = vmatprep.mubr.bf16.mxu1 %v1340_v5 }
 0x17d   : > { %954 = vmatmul.mubr.bf16.gmra.mrb[28].mxu1 %v1275_v60  ;;  %v766_v60 = vpop.permute.xlu0 %765 }
 0x218   : > { %v885_v62 = vpop.f32.mrb[0].mxu1 }
 0x219   : > { %v886_v63 = vadd.f32 %v885_v62, %v726_v61  ;;  %v887_v0 = vpop.f32.mrb[1].mxu1 }
 0x21a   : > { %v888_v2 = vadd.f32 %v887_v0, %v726_v61  ;;  %v889_v3 = vpop.f32.mrb[2].mxu1 }
 0x21b   : > { %v890_v4 = vadd.f32 %v889_v3, %v731_v1  ;;  %v891_v6 = vpop.f32.mrb[3].mxu1  ;;  %v964_v8 = vmax.f32 %v886_v63, 0.0 }
 0x21c   : > { %v892_v7 = vadd.f32 %v891_v6, %v731_v1  ;;  %v965_v10 = vmax.f32 %v888_v2, 0.0  ;;  %v771_v1 = vpop.permute.xlu1 %770 }
 0x21d   : > { %v966_v9 = vmax.f32 %v890_v4, 0.0 }
 0x21e   : > { %v967_v11 = vmax.f32 %v892_v7, 0.0 }
 0x21f   : > { %v997_v5 = vpack.c.bf16 %v966_v9, %v964_v8 }
 0x220   : > { %v998_v13 = vpack.c.bf16 %v967_v11, %v965_v10  ;;  %v895_v14 = vpop.f32.mrb[4].mxu1 }
 0x221   : > { %v896_v15 = vadd.f32 %v895_v14, %v736_v12  ;;  %v897_v16 = vpop.f32.mrb[5].mxu1 }
 0x222   : > { %v898_v18 = vadd.f32 %v897_v16, %v736_v12  ;;  %v899_v19 = vpop.f32.mrb[6].mxu1  ;;  %1023 = vmatprep.subr.bf16.mxu0 %v998_v13  ;;  %v776_v12 = vpop.permute.xlu0 %775 }
 0x223   : > { %v900_v20 = vadd.f32 %v899_v19, %v741_v17  ;;  %v901_v21 = vpop.f32.mrb[7].mxu1  ;;  %1024 = vmatpush1.bf16.msra.mxu0 %v997_v5  ;;  %v968_v23 = vmax.f32 %v896_v15, 0.0 }
 0x224   : > { %v902_v22 = vadd.f32 %v901_v21, %v741_v17  ;;  %v969_v25 = vmax.f32 %v898_v18, 0.0  ;;  %v781_v17 = vpop.permute.xlu1 %780 }
 0x225   : > { %v970_v24 = vmax.f32 %v900_v20, 0.0 }
 0x226   : > { %v971_v26 = vmax.f32 %v902_v22, 0.0 }
 0x227   : > { %v999_v27 = vpack.c.bf16 %v970_v24, %v968_v23 }
 0x228   : > { %v1000_v29 = vpack.c.bf16 %v971_v26, %v969_v25  ;;  %v905_v30 = vpop.f32.mrb[8].mxu1 }
 0x229   : > { %v906_v31 = vadd.f32 %v905_v30, %v746_v28  ;;  %v907_v32 = vpop.f32.mrb[9].mxu1 }
 0x22a   : > { %v908_v34 = vadd.f32 %v907_v32, %v746_v28  ;;  %v909_v35 = vpop.f32.mrb[10].mxu1  ;;  %1025 = vmatprep.subr.bf16.mxu0 %v1000_v29  ;;  %v786_v28 = vpop.permute.xlu0 %785 }
 0x22b   : > { %v910_v36 = vadd.f32 %v909_v35, %v751_v33  ;;  %v911_v37 = vpop.f32.mrb[11].mxu1  ;;  %1026 = vmatpush1.bf16.msra.mxu0 %v999_v27  ;;  %v972_v39 = vmax.f32 %v906_v31, 0.0 }
 0x22c   : > { %v912_v38 = vadd.f32 %v911_v37, %v751_v33  ;;  %v973_v41 = vmax.f32 %v908_v34, 0.0  ;;  %v791_v33 = vpop.permute.xlu1 %790 }
 0x22d   : > { %v974_v40 = vmax.f32 %v910_v36, 0.0 }
 0x22e   : > { %v975_v42 = vmax.f32 %v912_v38, 0.0 }
 0x22f   : > { %v1001_v43 = vpack.c.bf16 %v974_v40, %v972_v39 }
 0x230   : > { %v1002_v45 = vpack.c.bf16 %v975_v42, %v973_v41  ;;  %v915_v46 = vpop.f32.mrb[12].mxu1 }
 0x231   : > { %v916_v47 = vadd.f32 %v915_v46, %v756_v44  ;;  %v917_v48 = vpop.f32.mrb[13].mxu1 }
 0x232   : > { %v918_v50 = vadd.f32 %v917_v48, %v756_v44  ;;  %v919_v51 = vpop.f32.mrb[14].mxu1  ;;  %1027 = vmatprep.subr.bf16.mxu0 %v1002_v45  ;;  %v796_v44 = vpop.permute.xlu0 %795 }
 0x233   : > { %v920_v52 = vadd.f32 %v919_v51, %v761_v49  ;;  %v921_v53 = vpop.f32.mrb[15].mxu1  ;;  %1028 = vmatpush1.bf16.msra.mxu0 %v1001_v43  ;;  %v976_v55 = vmax.f32 %v916_v47, 0.0 }
 0x234   : > { %v922_v54 = vadd.f32 %v921_v53, %v761_v49  ;;  %v977_v57 = vmax.f32 %v918_v50, 0.0  ;;  %v801_v49 = vpop.permute.xlu1 %800 }
 0x235   : > { %v978_v56 = vmax.f32 %v920_v52, 0.0 }
 0x236   : > { %v979_v58 = vmax.f32 %v922_v54, 0.0 }
 0x237   : > { %v1003_v59 = vpack.c.bf16 %v978_v56, %v976_v55 }
 0x238   : > { %v1004_v61 = vpack.c.bf16 %v979_v58, %v977_v57  ;;  %v925_v62 = vpop.f32.mrb[16].mxu1 }
 0x239   : > { %v926_v63 = vadd.f32 %v925_v62, %v766_v60  ;;  %v927_v0 = vpop.f32.mrb[17].mxu1  ;;  %v1019_v62 = vlaneseq }
 0x23a   : > { %v928_v2 = vadd.f32 %v927_v0, %v766_v60  ;;  %v929_v3 = vpop.f32.mrb[18].mxu1  ;;  %1029 = vmatprep.subr.bf16.mxu0 %v1004_v61  ;;  %v996_v61 = vld [vmem:[%s1675_s5] sm:$0x1]  ;;  %v1341_v0 = vmov 1966171168  }
 0x23b   : > { %v930_v4 = vadd.f32 %v929_v3, %v771_v1  ;;  %v931_v6 = vpop.f32.mrb[19].mxu1  ;;  %1030 = vmatpush1.bf16.msra.mxu0 %v1003_v59  ;;  %v980_v8 = vmax.f32 %v926_v63, 0.0  ;;  %v1020_v63 = vshrl.u32 %v1019_v62, 7  ;;  %v1017_v3 = vpop.permute.xlu0 %1016  ;;  %vm1084_vm1 = vcmp.lt.s32.totalorder %v1019_v62, 256 }
 0x23c   : > { %v932_v7 = vadd.f32 %v931_v6, %v771_v1  ;;  %v981_v10 = vmax.f32 %v928_v2, 0.0  ;;  %v1068_v1 = vunpack.c.l.s4 %v1341_v0 }
 0x23d   : > { %v982_v9 = vmax.f32 %v930_v4, 0.0  ;;  %v1021_v2 = vsub.s32 0, %v1020_v63 }
 0x23e   : > { %v983_v11 = vmax.f32 %v932_v7, 0.0  ;;  %v1069_v4 = vunpack.c.0.s8 %v1068_v1 }
 0x23f   : > { %v1005_v5 = vpack.c.bf16 %v982_v9, %v980_v8  ;;  %v1022_v6 = vrot.slane %v1017_v3, %v1021_v2 }
 0x240   : > { %v1006_v13 = vpack.c.bf16 %v983_v11, %v981_v10  ;;  %v935_v14 = vpop.f32.mrb[20].mxu1  ;;  %v1072_v11 = vsub.s32 %v1069_v4, %v1020_v63 }
 0x241   : > { %v936_v15 = vadd.f32 %v935_v14, %v776_v12  ;;  %v937_v16 = vpop.f32.mrb[21].mxu1 }
 0x242   : > { %v938_v18 = vadd.f32 %v937_v16, %v776_v12  ;;  %v939_v19 = vpop.f32.mrb[22].mxu1  ;;  %1031 = vmatprep.subr.bf16.mxu0 %v1006_v13 }
 0x243   : > { %v940_v20 = vadd.f32 %v939_v19, %v781_v17  ;;  %v941_v21 = vpop.f32.mrb[23].mxu1  ;;  %1032 = vmatpush1.bf16.msra.mxu0 %v1005_v5  ;;  %v984_v23 = vmax.f32 %v936_v15, 0.0 }
 0x244   : > { %v942_v22 = vadd.f32 %v941_v21, %v781_v17  ;;  %v985_v25 = vmax.f32 %v938_v18, 0.0 }
 0x245   : > { %v986_v24 = vmax.f32 %v940_v20, 0.0 }
 0x246   : > { %v987_v26 = vmax.f32 %v942_v22, 0.0 }
 0x247   : > { %v1007_v27 = vpack.c.bf16 %v986_v24, %v984_v23 }
 0x248   : > { %v1008_v29 = vpack.c.bf16 %v987_v26, %v985_v25  ;;  %v945_v30 = vpop.f32.mrb[24].mxu1 }
 0x249   : > { %v946_v31 = vadd.f32 %v945_v30, %v786_v28  ;;  %v947_v32 = vpop.f32.mrb[25].mxu1 }
 0x24a   : > { %v948_v34 = vadd.f32 %v947_v32, %v786_v28  ;;  %v949_v35 = vpop.f32.mrb[26].mxu1  ;;  %1033 = vmatprep.subr.bf16.mxu0 %v1008_v29 }
 0x24b   : > { %v950_v36 = vadd.f32 %v949_v35, %v791_v33  ;;  %v951_v37 = vpop.f32.mrb[27].mxu1  ;;  %1034 = vmatpush1.bf16.msra.mxu0 %v1007_v27  ;;  %v988_v39 = vmax.f32 %v946_v31, 0.0 }
 0x24c   : > { %v952_v38 = vadd.f32 %v951_v37, %v791_v33  ;;  %v989_v41 = vmax.f32 %v948_v34, 0.0 }
 0x24d   : > { %v990_v40 = vmax.f32 %v950_v36, 0.0 }
 0x24e   : > { %v991_v42 = vmax.f32 %v952_v38, 0.0 }
 0x24f   : > { %v1009_v43 = vpack.c.bf16 %v990_v40, %v988_v39 }
 0x250   : > { %v1010_v45 = vpack.c.bf16 %v991_v42, %v989_v41  ;;  %v955_v46 = vpop.f32.mrb[28].mxu1 }
 0x251   : > { %v956_v47 = vadd.f32 %v955_v46, %v796_v44  ;;  %v957_v48 = vpop.f32.mrb[29].mxu1 }
 0x252   : > { %v958_v50 = vadd.f32 %v957_v48, %v796_v44  ;;  %v959_v51 = vpop.f32.mrb[30].mxu1  ;;  %1035 = vmatprep.subr.bf16.mxu0 %v1010_v45 }
 0x253   : > { %v960_v52 = vadd.f32 %v959_v51, %v801_v49  ;;  %v961_v53 = vpop.f32.mrb[31].mxu1  ;;  %1036 = vmatpush1.bf16.msra.mxu0 %v1009_v43  ;;  %v992_v55 = vmax.f32 %v956_v47, 0.0 }
 0x254   : > { %v962_v54 = vadd.f32 %v961_v53, %v801_v49  ;;  %v993_v57 = vmax.f32 %v958_v50, 0.0 }
 0x255   : > { %v994_v56 = vmax.f32 %v960_v52, 0.0 }
 0x256   : > { %v995_v58 = vmax.f32 %v962_v54, 0.0 }
 0x257   : > { %v1011_v59 = vpack.c.bf16 %v994_v56, %v992_v55 }
 0x258   : > { %v1012_v60 = vpack.c.bf16 %v995_v58, %v993_v57 }
 0x25a   : > { %1037 = vmatprep.subr.bf16.mxu0 %v1012_v60 }
 0x25b   : > { %1038 = vmatpush1.bf16.msra.mxu0 %v1011_v59 }
 0x25e   : > { %1056 = vmatmul.mubr.bf16.vlgmr.msra.gmra.mrb[32].mxu0 %v996_v61 }
 0x331   : > { %v1057_v7 = vpop.f32.mrb[32].mxu0 }
 0x332   : > { %v1058_v8 = vadd.f32 %v1057_v7, %v1022_v6  ;;  %v1059_v9 = vpop.f32.mrb[33].mxu0 }
 0x333   : > { %v1060_v10 = vadd.f32 %v1059_v9, %v1022_v6  ;;  %v1061_v5 = vpop.f32.mrb[34].mxu0 }
 0x334   : > { %v1062_v12 = vpop.f32.mrb[35].mxu0 }
 0x335   : > { %v1066_v13 = vcombine.low %v1058_v8, %v1060_v10 }
 0x337   : > { %v1073_v14 = vrot.slane %v1066_v13, %v1072_v11 }
 0x339   : > { %v1080_v15 = vrot.slane %v1073_v14, %v1072_v11 }
 0x33b   : > { %1086 = vst.msk [vmem:[%s325_s30] sm:$0x3] %vm1084_vm1, %v1080_v15 }
 0x33c   : > { %1289 = shalt.err (!%p1286_p5)
}
 0x33d   : > { %s1290_s21 = scalar_lea.hbm %s1626_s15, 32  ;;  %s1294_s23 = scalar_lea.hbm %s1677_s7, 64 }
 0x33e   : > { %p1291_p7 = scmp.ne.s32.totalorder %s1626_s15, %s1290_s21  ;;  %p1295_p12 = scmp.lt.u32.totalorder %s1626_s15, %s1677_s7 }
 0x33f   : > { %p1296_p13 = scmp.lt.u32.totalorder %s1294_s23, %s1290_s21  ;;  %p1298_p1 = scmp.lt.u32.totalorder %s1290_s21, %s1626_s15 }
 0x340   : > { %p1292_p10 = pnand %p1291_p7, %p1424_p6 }
 0x341   : > { %p1297_p0 = por %p1296_p13, %p1295_p12 }
 0x342   : > { %p1293_p11 = pneg %p1292_p10 }
 0x343   : > { %p1299_p2 = por %p1298_p1, %p1297_p0 }
 0x345   : > { %p1300_p3 = pnand %p1299_p2, %p1293_p11 }
 0x347   : > { %1303 = shalt.err (!%p1300_p3)
}
 0x348   : > { %1211 = dma.vmem_to_hbm [thread:$0]  (%p1424_p6), %s1628_s9, 32, %s1626_s15, %s1088_s16  }
 0x349 PF: > { %s1114_s30 = sand.u32 1, %s1326_s26   ;;  %p1214_p4 = pnand %p1169_p9, %p1428_p8 }
 0x34a   : > { %s1115_s10 = scalar_lea.sflag [#allocation5], %s1114_s30 }
 0x34b   : > { %1321 = dma.done.wait (!%p1214_p4), %s1115_s10, 32  }
 0x34c   : > { %1323 = vsyncadd (!%p1214_p4), %s1115_s10, 4294967264  ;;  %p19_p5 = scmp.ge.s32.totalorder %s1409_s8, 4   ;;  %s1680_s26 = smov %s1330_s27 }
 0x34d   : > { %s1681_s27 = smov %s1334_s28  ;;  %s1682_s28 = smov %s1422_s11 }
 0x34e   : > { %s1683_s29 = smov %s1409_s8  ;;  %21 = sbr.rel (!%p19_p5) target bundleno = 6 (0x6), region = 126 }
 0x355   :  { %1120 = vsyncpa [#allocation5], 1 }
 0x356   :  { %1122 = vsyncpa [#allocation5 + $0x1], 1 }

</bundles_post_ra>
